<compile_context>
chip_gen: v7x
topology: tpu7x:2x2x1
jax: 0.10.0
libtpu: 0.0.40
codegen_flags: <defaults>
</compile_context>

<pallas_src>
import jax
import jax.numpy as jnp
from jax import lax
from jax.experimental import pallas as pl
from jax.experimental.pallas import tpu as pltpu

BN_EPS = 1e-5
LANE = 128      # lane width: feature axes padded to multiples of this
SUBLANE = 8     # sublane width: batch axis padded to multiples of this
DEFAULT_VMEM_BUDGET = 24 * 1024 * 1024  # fits default scoped VMEM on v5e/v6e/v7x


# ---------------------------------------------------------------------------
# Kernel bodies
# ---------------------------------------------------------------------------
def _bn_relu_epilogue(h, gamma, beta, true_b):
    """Fused BatchNorm1d (batch statistics, two-pass) + ReLU on a resident tile."""
    inv_b = 1.0 / true_b
    # Padded batch rows are exact zeros (zero x rows @ W), so the sum is exact
    # as long as the divisor is the true batch size.
    mean = jnp.sum(h, axis=0, keepdims=True) * inv_b
    centered = h - mean
    if true_b != h.shape[0]:
        row = lax.broadcasted_iota(jnp.int32, h.shape, 0)
        centered = jnp.where(row < true_b, centered, 0.0)
    var = jnp.sum(centered * centered, axis=0, keepdims=True) * inv_b
    scale = gamma * lax.rsqrt(var + BN_EPS)          # EUP rsqrt (free slot)
    shift = beta - mean * scale
    # ReLU; Dropout is identity here.
    # TODO(synk): training-mode stochastic dropout (pltpu.prng_random_bits mask
    # scaled by 1/(1-p)) and BatchNorm running-stat updates are not implemented.
    return jnp.maximum(h * scale + shift, 0.0)


def _make_fullk_kernel(true_b):
    """Full-K kernel: whole contraction resident, 1-D grid over output tiles."""
    def kernel(x_ref, w_ref, gamma_ref, beta_ref, o_ref):
        h = jnp.dot(x_ref[...], w_ref[...], preferred_element_type=jnp.float32)
        o_ref[...] = _bn_relu_epilogue(h, gamma_ref[...], beta_ref[...], true_b)
    return kernel


def _make_ktiled_kernel(true_b):
    """K-tiled kernel: accumulate directly into the resident output tile."""
    def kernel(x_ref, w_ref, gamma_ref, beta_ref, o_ref):
        k = pl.program_id(1)

        @pl.when(k == 0)
        def _():
            o_ref[...] = jnp.zeros_like(o_ref)

        o_ref[...] += jnp.dot(x_ref[...], w_ref[...],
                              preferred_element_type=jnp.float32)

        @pl.when(k == pl.num_programs(1) - 1)
        def _():
            o_ref[...] = _bn_relu_epilogue(
                o_ref[...], gamma_ref[...], beta_ref[...], true_b)
    return kernel


# ---------------------------------------------------------------------------
# Wrapper helpers
# ---------------------------------------------------------------------------
def _pad_axis(a, axis, multiple):
    pad = (-a.shape[axis]) % multiple
    if pad == 0:
        return a
    widths = [(0, 0)] * a.ndim
    widths[axis] = (0, pad)
    return jnp.pad(a, widths)


def _tile_candidates(dim):
    return [dim] + [t for t in (1024, 512, 256, 128) if t < dim and dim % t == 0]


def _vmem_estimate(b_p, tk, tn, w_bufs):
    x_bytes = 2 * b_p * tk * 2        # bf16 activation slab, double-buffered
    w_bytes = w_bufs * tk * tn * 2    # bf16 weight tile
    o_bytes = 2 * b_p * tn * 4        # f32 output tile (doubles as the accumulator)
    p_bytes = 2 * 2 * tn * 4          # gamma + beta
    return x_bytes + w_bytes + o_bytes + p_bytes


def _select_tiles(b_p, f_in_p, f_out_p, budget):
    """Return (tn, tk, w_bufs); prefer keeping the whole contraction resident."""
    # 1) No K tiling if the full contraction fits: x is read from HBM once.
    for tn in _tile_candidates(f_out_p):
        if _vmem_estimate(b_p, f_in_p, tn, w_bufs=2) <= budget:
            return tn, f_in_p, 2
    # 2) Tile K; with small batches the per-step matmul is short, so use a
    #    third weight buffer to keep the weight DMA hidden.
    w_bufs = 3 if b_p <= 128 else 2
    tk_cands = [t for t in (1024, 512, 256, 128) if t < f_in_p and f_in_p % t == 0]
    for tn in _tile_candidates(f_out_p):           # large tn first -> more x reuse
        for tk in tk_cands:
            if _vmem_estimate(b_p, tk, tn, w_bufs) <= budget:
                return tn, tk, w_bufs
    # 3) Fallback: smallest lane-dense tiles (vmem_limit is raised accordingly).
    return 128, min(128, f_in_p), 2


def prepare_trainable_block1d_params(weight, gamma, beta):
    """One-time parameter prep, hoisted out of the per-call forward.

    weight: torch nn.Linear weight, shape (out_features, in_features).
    Returns lane-padded bf16 W^T and lane-padded f32 BatchNorm affine params.
    The Linear bias is intentionally dropped: BatchNorm's mean subtraction
    cancels it exactly.
    """
    f_out, f_in = weight.shape
    w_t = jnp.asarray(weight, jnp.float32).T.astype(jnp.bfloat16)   # (f_in, f_out)
    w_p = _pad_axis(_pad_axis(w_t, 0, LANE), 1, LANE)
    gamma_p = _pad_axis(jnp.asarray(gamma, jnp.float32).reshape(1, -1), 1, LANE)
    beta_p = _pad_axis(jnp.asarray(beta, jnp.float32).reshape(1, -1), 1, LANE)
    return {"w": w_p, "gamma": gamma_p, "beta": beta_p,
            "f_in": f_in, "f_out": f_out}


def trainable_block1d_forward(x, params, *, vmem_budget=DEFAULT_VMEM_BUDGET):
    """Fused Linear -> BatchNorm1d(batch stats) -> ReLU -> Dropout(identity).

    Args:
      x:      (B, F_in) f32 activations.
      params: output of prepare_trainable_block1d_params (pre-padded bf16 W^T,
              padded f32 gamma/beta).
    """
    w_p, gamma_p, beta_p = params["w"], params["gamma"], params["beta"]
    f_in, f_out = params["f_in"], params["f_out"]
    b = x.shape[0]
    assert x.shape == (b, f_in)
    f_in_p, f_out_p = w_p.shape

    # Lane-dense feature padding + sublane-dense batch padding; bf16 MXU operand.
    x_p = _pad_axis(_pad_axis(x.astype(jnp.bfloat16), 1, LANE), 0, SUBLANE)
    b_p = x_p.shape[0]

    tn, tk, w_bufs = _select_tiles(b_p, f_in_p, f_out_p, vmem_budget)
    usage = _vmem_estimate(b_p, tk, tn, w_bufs)
    vmem_limit = int(min(max(32 * 1024 * 1024, usage * 3 // 2), 64 * 1024 * 1024))

    if tk == f_in_p:
        # Full contraction resident: 1-D grid over output-feature tiles.
        kernel = _make_fullk_kernel(b)
        grid = (f_out_p // tn,)
        in_specs = [
            pl.BlockSpec((b_p, f_in_p), lambda j: (0, 0)),   # x: resident across j
            pl.BlockSpec((f_in_p, tn), lambda j: (0, j)),    # W^T column slab
            pl.BlockSpec((1, tn), lambda j: (0, j)),         # gamma
            pl.BlockSpec((1, tn), lambda j: (0, j)),         # beta
        ]
        out_spec = pl.BlockSpec((b_p, tn), lambda j: (0, j))
        dim_sem = ("parallel",)
    else:
        # K (reduction) axis last; output block index constant across K so
        # o_ref stays resident and serves as the accumulator.
        kernel = _make_ktiled_kernel(b)
        grid = (f_out_p // tn, f_in_p // tk)
        if w_bufs > 2:
            w_spec = pl.BlockSpec((tk, tn), lambda j, k: (k, j),
                                  pipeline_mode=pl.Buffered(w_bufs))
        else:
            w_spec = pl.BlockSpec((tk, tn), lambda j, k: (k, j))
        in_specs = [
            pl.BlockSpec((b_p, tk), lambda j, k: (0, k)),    # x K-slab
            w_spec,                                           # W tile
            pl.BlockSpec((1, tn), lambda j, k: (0, j)),      # gamma (K-const)
            pl.BlockSpec((1, tn), lambda j, k: (0, j)),      # beta  (K-const)
        ]
        out_spec = pl.BlockSpec((b_p, tn), lambda j, k: (0, j))
        dim_sem = ("parallel", "arbitrary")

    out = pl.pallas_call(
        kernel,
        out_shape=jax.ShapeDtypeStruct((b_p, f_out_p), jnp.float32),
        grid_spec=pltpu.PrefetchScalarGridSpec(
            num_scalar_prefetch=0,
            grid=grid,
            in_specs=in_specs,
            out_specs=out_spec,
        ),
        compiler_params=pltpu.CompilerParams(
            dimension_semantics=dim_sem,
            vmem_limit_bytes=vmem_limit,
        ),
    )(x_p, w_p, gamma_p, beta_p)

    return out[:b, :f_out]


# ---------------------------------------------------------------------------
# Pure-JAX reference (keeps the Linear bias to demonstrate its cancellation)
# ---------------------------------------------------------------------------
def reference_forward(x, weight, bias, gamma, beta):
    w_t = jnp.asarray(weight, jnp.float32).T
    h = jnp.dot(x.astype(jnp.bfloat16), w_t.astype(jnp.bfloat16),
                preferred_element_type=jnp.float32)
    h = h + bias.reshape(1, -1)
    mean = jnp.mean(h, axis=0, keepdims=True)
    var = jnp.mean((h - mean) ** 2, axis=0, keepdims=True)
    y = (h - mean) / jnp.sqrt(var + BN_EPS)
    y = y * gamma.reshape(1, -1) + beta.reshape(1, -1)
    return jnp.maximum(y, 0.0)


if __name__ == "__main__":
    base_key = jax.random.PRNGKey(0)

    def _run_case(B, F_in, F_out, case_idx, vmem_budget=DEFAULT_VMEM_BUDGET):
        key = jax.random.fold_in(base_key, case_idx)
        k_x, k_w, k_b, k_g, k_beta = jax.random.split(key, 5)
        x = jax.random.normal(k_x, (B, F_in), dtype=jnp.float32)
        # torch Linear weight layout: (out_features, in_features).
        weight = (jax.random.normal(k_w, (F_out, F_in), dtype=jnp.float32)
                  / jnp.sqrt(F_in))
        bias = 0.1 * jax.random.normal(k_b, (F_out,), dtype=jnp.float32)
        gamma = 1.0 + 0.1 * jax.random.normal(k_g, (F_out,), dtype=jnp.float32)
        beta = 0.1 * jax.random.normal(k_beta, (F_out,), dtype=jnp.float32)

        params = prepare_trainable_block1d_params(weight, gamma, beta)
        out = jax.block_until_ready(
            trainable_block1d_forward(x, params, vmem_budget=vmem_budget))
        ref = reference_forward(x, weight, bias, gamma, beta)
        assert out.shape == (B, F_out)
        assert jnp.allclose(out, ref, atol=2e-3, rtol=2e-3), (
            f"mismatch vs pure-JAX reference "
            f"(B={B}, F_in={F_in}, F_out={F_out})")

    # 1) Lane-dense, full-K resident path: grid = (1,), no K phases.
    _run_case(B=8, F_in=256, F_out=256, case_idx=0)
    # 2) Ragged dims: exercises feature lane-padding (96->128, 160->256) and
    #    batch sublane padding (6->8) with the masked two-pass variance.
    _run_case(B=6, F_in=96, F_out=160, case_idx=1)
    # 3) Tiny VMEM budget to force the K-tiled accumulate-into-output path
    #    (grid (4, 4), Buffered(3) weight pipeline) on small shapes.
    _run_case(B=64, F_in=512, F_out=512, case_idx=2, vmem_budget=300_000)

    print("KERNEL_OK")
</pallas_src>

<mosaic_0001>
module attributes {stable_mosaic.version = 11 : i64} {
  func.func @kernel(%arg0: i32, %arg1: memref<8x256xbf16, #tpu.memory_space<vmem>>, %arg2: memref<256x256xbf16, #tpu.memory_space<vmem>>, %arg3: memref<1x256xf32, #tpu.memory_space<vmem>>, %arg4: memref<1x256xf32, #tpu.memory_space<vmem>>, %arg5: memref<8x256xf32, #tpu.memory_space<vmem>>) attributes {dimension_semantics = [#tpu.dimension_semantics<parallel>], iteration_bounds = array<i64: 1>, scalar_prefetch = 0 : i64, scratch_operands = 0 : i64, tpu.core_type = #tpu.core_type<tc>, window_params = [{pipeline_mode = #tpu.pipeline_mode<synchronous>, transform_indices = @transform_0, window_bounds = array<i64: 8, 256>}, {transform_indices = @transform_1, window_bounds = array<i64: 256, 256>}, {transform_indices = @transform_2, window_bounds = array<i64: 1, 256>}, {transform_indices = @transform_3, window_bounds = array<i64: 1, 256>}, {transform_indices = @transform_4, window_bounds = array<i64: 8, 256>}]} {
    %c0 = arith.constant 0 : index
    %c0_0 = arith.constant 0 : index
    %0 = vector.load %arg1[%c0, %c0_0] : memref<8x256xbf16, #tpu.memory_space<vmem>>, vector<8x256xbf16>
    %c0_1 = arith.constant 0 : index
    %c0_2 = arith.constant 0 : index
    %1 = vector.load %arg2[%c0_1, %c0_2] : memref<256x256xbf16, #tpu.memory_space<vmem>>, vector<256x256xbf16>
    %cst = arith.constant dense<0.000000e+00> : vector<8x256xf32>
    %2 = tpu.matmul %0, %1, %cst {dimension_numbers = #tpu.dot_dimension_numbers<[1], [0], [0], [1], [0, 0, 1, 1], [], []>} : vector<8x256xbf16>, vector<256x256xbf16>, vector<8x256xf32> -> vector<8x256xf32>
    %c0_3 = arith.constant 0 : index
    %c0_4 = arith.constant 0 : index
    %3 = vector.load %arg3[%c0_3, %c0_4] : memref<1x256xf32, #tpu.memory_space<vmem>>, vector<1x256xf32>
    %c0_5 = arith.constant 0 : index
    %c0_6 = arith.constant 0 : index
    %4 = vector.load %arg4[%c0_5, %c0_6] : memref<1x256xf32, #tpu.memory_space<vmem>>, vector<1x256xf32>
    %cst_7 = arith.constant dense<0.000000e+00> : vector<256xf32>
    %5 = vector.multi_reduction <add>, %2, %cst_7 [0] : vector<8x256xf32> to vector<256xf32>
    %6 = vector.shape_cast %5 : vector<256xf32> to vector<1x256xf32>
    %cst_8 = arith.constant 1.250000e-01 : f32
    %7 = vector.broadcast %cst_8 : f32 to vector<1x256xf32>
    %8 = arith.mulf %6, %7 : vector<1x256xf32>
    %9 = vector.broadcast %8 : vector<1x256xf32> to vector<8x256xf32>
    %10 = arith.subf %2, %9 : vector<8x256xf32>
    %11 = arith.mulf %10, %10 : vector<8x256xf32>
    %cst_9 = arith.constant dense<0.000000e+00> : vector<256xf32>
    %12 = vector.multi_reduction <add>, %11, %cst_9 [0] : vector<8x256xf32> to vector<256xf32>
    %13 = vector.shape_cast %12 : vector<256xf32> to vector<1x256xf32>
    %cst_10 = arith.constant 1.250000e-01 : f32
    %14 = vector.broadcast %cst_10 : f32 to vector<1x256xf32>
    %15 = arith.mulf %13, %14 : vector<1x256xf32>
    %cst_11 = arith.constant 9.99999974E-6 : f32
    %16 = vector.broadcast %cst_11 : f32 to vector<1x256xf32>
    %17 = arith.addf %15, %16 : vector<1x256xf32>
    %18 = math.rsqrt %17 : vector<1x256xf32>
    %19 = arith.mulf %3, %18 : vector<1x256xf32>
    %20 = arith.mulf %8, %19 : vector<1x256xf32>
    %21 = arith.subf %4, %20 : vector<1x256xf32>
    %22 = vector.broadcast %19 : vector<1x256xf32> to vector<8x256xf32>
    %23 = arith.mulf %2, %22 : vector<8x256xf32>
    %24 = vector.broadcast %21 : vector<1x256xf32> to vector<8x256xf32>
    %25 = arith.addf %23, %24 : vector<8x256xf32>
    %cst_12 = arith.constant 0.000000e+00 : f32
    %26 = vector.broadcast %cst_12 : f32 to vector<8x256xf32>
    %27 = arith.maximumf %25, %26 : vector<8x256xf32>
    %c0_13 = arith.constant 0 : index
    %c0_14 = arith.constant 0 : index
    %28 = vector.load %arg5[%c0_13, %c0_14] : memref<8x256xf32, #tpu.memory_space<vmem>>, vector<8x256xf32>
    tpu.vector_store %arg5[%c0_13, %c0_14], %27 {strides = array<i32>} : memref<8x256xf32, #tpu.memory_space<vmem>>, vector<8x256xf32>,
    return
  }
  func.func @transform_0(%arg0: i32) -> (i32, i32) {
    %c0_i32 = arith.constant 0 : i32
    %c0_i32_0 = arith.constant 0 : i32
    %c0_i32_1 = arith.constant 0 : i32
    return %c0_i32, %c0_i32_0 : i32, i32
  }
  func.func @transform_1(%arg0: i32) -> (i32, i32) {
    %c0_i32 = arith.constant 0 : i32
    %c0_i32_0 = arith.constant 0 : i32
    return %c0_i32, %arg0 : i32, i32
  }
  func.func @transform_2(%arg0: i32) -> (i32, i32) {
    %c0_i32 = arith.constant 0 : i32
    %c0_i32_0 = arith.constant 0 : i32
    return %c0_i32, %arg0 : i32, i32
  }
  func.func @transform_3(%arg0: i32) -> (i32, i32) {
    %c0_i32 = arith.constant 0 : i32
    %c0_i32_0 = arith.constant 0 : i32
    return %c0_i32, %arg0 : i32, i32
  }
  func.func @transform_4(%arg0: i32) -> (i32, i32) {
    %c0_i32 = arith.constant 0 : i32
    %c0_i32_0 = arith.constant 0 : i32
    return %c0_i32, %arg0 : i32, i32
  }
}

</mosaic_0001>

<bundles_post_ra>
// kernel: tpu_custom_call.1
= control target key start
LH: loop header
LB: loop body
LE: loop exit
PB: predicated region body
PF: predicated region fallthrough
CT: control target
= control target key end

     0   :  { %9 = vsyncpa [#allocation3], 0  ;;  %s655_s0 = inlined_call_operand.hbm [shape: bf16[8,256], index: 0, kind: input, shape index: {}]   ;;  %s656_s1 = inlined_call_operand.hbm [shape: bf16[256,256], index: 1, kind: input, shape index: {}]   ;;  %s657_s2 = inlined_call_operand.vmem [shape: f32[1,256], index: 2, kind: input, shape index: {}]   ;;  %s658_s3 = inlined_call_operand.vmem [shape: f32[1,256], index: 3, kind: input, shape index: {}]   ;;  %s659_s4 = inlined_call_operand.hbm [shape: f32[8,256], index: 4, kind: output, shape index: {}]  }
   0x1   :  { %10 = vsyncpa [#allocation6], 0 }
   0x2   :  { %11 = vsyncpa [#allocation4], 0  ;;  %s575_s15 = smov [#allocation2]   ;;  %s576_s17 = smov [#allocation5]  }
   0x3   :  { %s18_s16 = sshll.u32 %s575_s15, 4  ;;  %s27_s18 = sshll.u32 %s576_s17, 4  ;;  %s19_s16 = int_to_ptr.vmem [resolvable:$true] %s18_s16  ;;  %s606_s18 = int_to_ptr.vmem [resolvable:$true] %s27_s18 }
   0x4   :  { %s503_s21 = scalar_lea.hbm %s655_s0, 128 }
   0x5   :  { %p504_p0 = scmp.ne.s32.totalorder %s655_s0, %s503_s21  ;;  %p507_p1 = scmp.lt.u32.totalorder %s503_s21, %s655_s0 }
   0x7   :  { %p509_p2 = pnand %p507_p1, %p504_p0 }
   0x9   :  { %512 = shalt.err (!%p509_p2)
}
   0xa   :  { %s513_s26 = scalar_lea.vmem %s19_s16, 128  ;;  %p518_p4 = scmp.lt.s32.totalorder %s19_s16, %s19_s16 }
   0xb   :  { %p514_p3 = scmp.ne.s32.totalorder %s19_s16, %s513_s26  ;;  %p519_p5 = scmp.lt.s32.totalorder %s513_s26, %s513_s26 }
   0xd   :  { %p520_p6 = por %p519_p5, %p518_p4 }
   0xf   :  { %p521_p7 = pnand %p520_p6, %p514_p3 }
  0x11   :  { %524 = shalt.err (!%p521_p7)
}
  0x12   :  { %21 = dma.hbm_to_vmem [thread:$0]  %s655_s0, 128, %s19_s16, [#allocation3]  }
  0x13   :  { %s525_s5 = scalar_lea.hbm %s656_s1, 4096 }
  0x14   :  { %p526_p8 = scmp.ne.s32.totalorder %s656_s1, %s525_s5  ;;  %p529_p9 = scmp.lt.u32.totalorder %s525_s5, %s656_s1 }
  0x16   :  { %p531_p10 = pnand %p529_p9, %p526_p8 }
  0x18   :  { %534 = shalt.err (!%p531_p10)
}
  0x19   :  { %s535_s10 = scalar_lea.vmem %s606_s18, 4096  ;;  %p540_p12 = scmp.lt.s32.totalorder %s606_s18, %s606_s18 }
  0x1a   :  { %p536_p11 = scmp.ne.s32.totalorder %s606_s18, %s535_s10  ;;  %p541_p13 = scmp.lt.s32.totalorder %s535_s10, %s535_s10 }
  0x1c   :  { %p542_p0 = por %p541_p13, %p540_p12 }
  0x1e   :  { %p543_p1 = pnand %p542_p0, %p536_p11 }
  0x20   :  { %546 = shalt.err (!%p543_p1)
}
  0x21   :  { %s577_s0 = smov 128   ;;  %s578_s11 = smov 8  }
  0x22   :  { %33 = dma.hbm_to_vmem [thread:$0]  %s656_s1, 4096, %s606_s18, [#allocation6], %s577_s0, %s577_s0, %s578_s11  }
  0x23   :  { %569 = dma.done.wait [#allocation3], 128  }
  0x24   :  { %570 = vsyncadd [#allocation3], 4294967168 }
  0x25   :  { %571 = dma.done.wait [#allocation6], 4096  }
  0x26   :  { %572 = vsyncadd [#allocation6], 4294963200  ;;  %v449_v0 = vld [vmem:[#allocation5 + $0x4] ss:$8 sps:$4 sm:$0xff]   ;;  %v451_v1 = vld [vmem:[#allocation5] ss:$8 sps:$4 sm:$0xff]  }
  0x27   :  { %244 = vmatprep.subr.bf16.mxu0 %v449_v0  ;;  %v452_v2 = vld [vmem:[#allocation5 + $0x14] ss:$8 sps:$4 sm:$0xff]   ;;  %v454_v3 = vld [vmem:[#allocation5 + $0x10] ss:$8 sps:$4 sm:$0xff]   ;;  %v455_v4 = vld [vmem:[#allocation5 + $0x24] ss:$8 sps:$4 sm:$0xff]  }
  0x28   :  { %245 = vmatpush1.bf16.msra.mxu0 %v451_v1  ;;  %v457_v5 = vld [vmem:[#allocation5 + $0x20] ss:$8 sps:$4 sm:$0xff]   ;;  %v458_v6 = vld [vmem:[#allocation5 + $0x34] ss:$8 sps:$4 sm:$0xff]   ;;  %v460_v7 = vld [vmem:[#allocation5 + $0x30] ss:$8 sps:$4 sm:$0xff]  }
  0x29   :  { %246 = vmatprep.subr.bf16.mxu0 %v452_v2  ;;  %v461_v8 = vld [vmem:[#allocation5 + $0x44] ss:$8 sps:$4 sm:$0xff]   ;;  %v463_v9 = vld [vmem:[#allocation5 + $0x40] ss:$8 sps:$4 sm:$0xff]   ;;  %v464_v10 = vld [vmem:[#allocation5 + $0x54] ss:$8 sps:$4 sm:$0xff]  }
  0x2a   :  { %v466_v11 = vld [vmem:[#allocation5 + $0x50] ss:$8 sps:$4 sm:$0xff]   ;;  %v467_v12 = vld [vmem:[#allocation5 + $0x64] ss:$8 sps:$4 sm:$0xff]   ;;  %v469_v15 = vld [vmem:[#allocation5 + $0x60] ss:$8 sps:$4 sm:$0xff]  }
  0x2b   :  { %v44_v13 = vld [vmem:[#allocation2] sm:$0xff]  ;;  %v473_v18 = vld [vmem:[#allocation5 + $0x84] ss:$8 sps:$4 sm:$0xff]   ;;  %v475_v19 = vld [vmem:[#allocation5 + $0x80] ss:$8 sps:$4 sm:$0xff]  }
  0x2c   :  { %247 = vmatpush1.bf16.msra.mxu0 %v454_v3  ;;  %v410_v14 = vcombine.high %v44_v13, %v44_v13  ;;  %v470_v16 = vld [vmem:[#allocation5 + $0x74] ss:$8 sps:$4 sm:$0xff]   ;;  %v472_v17 = vld [vmem:[#allocation5 + $0x70] ss:$8 sps:$4 sm:$0xff]   ;;  %v479_v22 = vld [vmem:[#allocation5 + $0xa4] ss:$8 sps:$4 sm:$0xff]   ;;  %v409_v34 = vcombine.low %v44_v13, %v44_v13 }
  0x2d   :  { %248 = vmatprep.subr.bf16.mxu0 %v455_v4  ;;  %v476_v20 = vld [vmem:[#allocation5 + $0x94] ss:$8 sps:$4 sm:$0xff]   ;;  %v478_v21 = vld [vmem:[#allocation5 + $0x90] ss:$8 sps:$4 sm:$0xff]   ;;  %v481_v23 = vld [vmem:[#allocation5 + $0xa0] ss:$8 sps:$4 sm:$0xff]  }
  0x2e   :  { %276 = vmatprep.mubr.bf16.mxu0 %v410_v14  ;;  %v482_v24 = vld [vmem:[#allocation5 + $0xb4] ss:$8 sps:$4 sm:$0xff]   ;;  %v484_v25 = vld [vmem:[#allocation5 + $0xb0] ss:$8 sps:$4 sm:$0xff]   ;;  %v485_v26 = vld [vmem:[#allocation5 + $0xc4] ss:$8 sps:$4 sm:$0xff]  }
  0x2f   :  { %v487_v27 = vld [vmem:[#allocation5 + $0xc0] ss:$8 sps:$4 sm:$0xff]   ;;  %v488_v28 = vld [vmem:[#allocation5 + $0xd4] ss:$8 sps:$4 sm:$0xff]   ;;  %v490_v29 = vld [vmem:[#allocation5 + $0xd0] ss:$8 sps:$4 sm:$0xff]  }
  0x30   :  { %249 = vmatpush1.bf16.msra.mxu0 %v457_v5  ;;  %v491_v30 = vld [vmem:[#allocation5 + $0xe4] ss:$8 sps:$4 sm:$0xff]   ;;  %v493_v31 = vld [vmem:[#allocation5 + $0xe0] ss:$8 sps:$4 sm:$0xff]   ;;  %v494_v32 = vld [vmem:[#allocation5 + $0xf4] ss:$8 sps:$4 sm:$0xff]  }
  0x31   :  { %250 = vmatprep.subr.bf16.mxu0 %v458_v6  ;;  %v496_v33 = vld [vmem:[#allocation5 + $0xf0] ss:$8 sps:$4 sm:$0xff]  }
  0x34   :  { %251 = vmatpush1.bf16.msra.mxu0 %v460_v7 }
  0x35   :  { %252 = vmatprep.subr.bf16.mxu0 %v461_v8 }
  0x38   :  { %253 = vmatpush1.bf16.msra.mxu0 %v463_v9  ;;  %v579_v9 = vmov 1966171168  }
  0x39   :  { %254 = vmatprep.subr.bf16.mxu0 %v464_v10  ;;  %v327_v10 = vunpack.c.l.s4 %v579_v9 }
  0x3c   :  { %255 = vmatpush1.bf16.msra.mxu0 %v466_v11  ;;  %v329_v11 = vlaneseq }
  0x3d   :  { %256 = vmatprep.subr.bf16.mxu0 %v467_v12  ;;  %v328_v12 = vunpack.c.0.s8 %v327_v10 }
  0x3e   :  { %v330_v13 = vshrl.u32 %v329_v11, 7 }
  0x40   :  { %257 = vmatpush1.bf16.msra.mxu0 %v469_v15  ;;  %v331_v15 = vsub.s32 %v328_v12, %v330_v13 }
  0x41   :  { %258 = vmatprep.subr.bf16.mxu0 %v470_v16 }
  0x44   :  { %259 = vmatpush1.bf16.msra.mxu0 %v472_v17 }
  0x45   :  { %260 = vmatprep.subr.bf16.mxu0 %v473_v18 }
  0x48   :  { %261 = vmatpush1.bf16.msra.mxu0 %v475_v19  ;;  %v285_v19 = vld [vmem:[%s657_s2] sm:$0x3]  ;;  %s580_s2 = smov [#allocation7]  }
  0x49   :  { %262 = vmatprep.subr.bf16.mxu0 %v476_v20  ;;  %s399_s17 = sshll.u32 %s580_s2, 4  ;;  %s400_s17 = int_to_ptr.vmem [resolvable:$true] %s399_s17 }
  0x4a   :  { %s547_s18 = scalar_lea.vmem %s400_s17, 256  ;;  %p552_p3 = scmp.lt.s32.totalorder %s400_s17, %s400_s17 }
  0x4b   :  { %p548_p2 = scmp.ne.s32.totalorder %s400_s17, %s547_s18  ;;  %p553_p4 = scmp.lt.s32.totalorder %s547_s18, %s547_s18 }
  0x4c   :  { %263 = vmatpush1.bf16.msra.mxu0 %v478_v21  ;;  %v349_v21 = vsub.s32 1, %v330_v13 }
  0x4d   :  { %264 = vmatprep.subr.bf16.mxu0 %v479_v22  ;;  %v345_v22 = vsub.s32 0, %v330_v13  ;;  %p554_p5 = por %p553_p4, %p552_p3 }
  0x4f   :  { %p555_p6 = pnand %p554_p5, %p548_p2 }
  0x50   :  { %265 = vmatpush1.bf16.msra.mxu0 %v481_v23 }
  0x51   :  { %266 = vmatprep.subr.bf16.mxu0 %v482_v24 }
  0x54   :  { %267 = vmatpush1.bf16.msra.mxu0 %v484_v25 }
  0x55   :  { %268 = vmatprep.subr.bf16.mxu0 %v485_v26 }
  0x58   :  { %269 = vmatpush1.bf16.msra.mxu0 %v487_v27 }
  0x59   :  { %270 = vmatprep.subr.bf16.mxu0 %v488_v28 }
  0x5c   :  { %271 = vmatpush1.bf16.msra.mxu0 %v490_v29 }
  0x5d   :  { %272 = vmatprep.subr.bf16.mxu0 %v491_v30 }
  0x60   :  { %273 = vmatpush1.bf16.msra.mxu0 %v493_v31 }
  0x61   :  { %274 = vmatprep.subr.bf16.mxu0 %v494_v32  ;;  %v286_v32 = vld [vmem:[%s658_s3] sm:$0x3] }
  0x64   :  { %275 = vmatpush1.bf16.msra.mxu0 %v496_v33 }
  0x67   :  { %277 = vmatmul.mubr.bf16.vlgmr.msra.gmra.mrb[0].mxu0 %v409_v34 }
 0x13a   :  { %v278_v35 = vpop.f32.mrb[0].mxu0 }
 0x13b   :  { %v287_v36 = vrot.slane %v278_v35, 4  ;;  %v280_v37 = vpop.f32.mrb[1].mxu0 }
 0x13c   :  { %v293_v38 = vrot.slane %v280_v37, 4  ;;  %v282_v39 = vpop.f32.mrb[2].mxu0 }
 0x13d   :  { %v288_v40 = vadd.f32 %v287_v36, %v278_v35  ;;  %v283_v41 = vpop.f32.mrb[3].mxu0 }
 0x13e   :  { %v294_v42 = vadd.f32 %v293_v38, %v280_v37 }
 0x13f   :  { %v289_v43 = vrot.slane %v288_v40, 2 }
 0x140   :  { %v295_v44 = vrot.slane %v294_v42, 2 }
 0x141   :  { %v290_v45 = vadd.f32 %v289_v43, %v288_v40 }
 0x142   :  { %v296_v46 = vadd.f32 %v295_v44, %v294_v42 }
 0x143   :  { %v291_v47 = vrot.slane %v290_v45, 1 }
 0x144   :  { %v297_v48 = vrot.slane %v296_v46, 1 }
 0x145   :  { %v292_v49 = vadd.f32 %v291_v47, %v290_v45 }
 0x146   :  { %v298_v50 = vadd.f32 %v297_v48, %v296_v46 }
 0x147   :  { %v299_v51 = vmul.f32 0.125, %v292_v49 }
 0x148   :  { %v300_v52 = vmul.f32 0.125, %v298_v50 }
 0x149   :  { %v301_v53 = vsub.f32 %v278_v35, %v299_v51 }
 0x14a   :  { %v302_v54 = vsub.f32 %v280_v37, %v300_v52 }
 0x14b   :  { %v303_v55 = vmul.f32 %v301_v53, %v301_v53 }
 0x14c   :  { %v304_v56 = vmul.f32 %v302_v54, %v302_v54 }
 0x14d   :  { %v305_v57 = vrot.slane %v303_v55, 4 }
 0x14e   :  { %v311_v58 = vrot.slane %v304_v56, 4 }
 0x14f   :  { %v306_v59 = vadd.f32 %v305_v57, %v303_v55 }
 0x150   :  { %v312_v60 = vadd.f32 %v311_v58, %v304_v56 }
 0x151   :  { %v307_v61 = vrot.slane %v306_v59, 2 }
 0x152   :  { %v313_v62 = vrot.slane %v312_v60, 2 }
 0x153   :  { %v308_v63 = vadd.f32 %v307_v61, %v306_v59 }
 0x154   :  { %v314_v0 = vadd.f32 %v313_v62, %v312_v60 }
 0x155   :  { %v309_v1 = vrot.slane %v308_v63, 1 }
 0x156   :  { %v315_v2 = vrot.slane %v314_v0, 1 }
 0x157   :  { %v310_v3 = vadd.f32 %v309_v1, %v308_v63 }
 0x158   :  { %v316_v4 = vadd.f32 %v315_v2, %v314_v0 }
 0x159   :  { %v317_v5 = vmul.f32 0.125, %v310_v3 }
 0x15a   :  { %v318_v6 = vmul.f32 0.125, %v316_v4 }
 0x15b   :  { %v319_v7 = vadd.f32 1e-05, %v317_v5 }
 0x15c   :  { %v320_v8 = vadd.f32 1e-05, %v318_v6 }
 0x15d   :  { %499 = vrsqrt.f32 %v319_v7 }
 0x15e   :  { %501 = vrsqrt.f32 %v320_v8 }
 0x167   :  { %v500_v14 = vpop.eup %499 }
 0x168   :  { %v502_v16 = vpop.eup %501 }
 0x169   :  { %v325_v17 = vcombine.low %v500_v14, %v502_v16 }
 0x16b   :  { %v332_v18 = vrot.slane %v325_v17, %v331_v15 }
 0x16d   :  { %v339_v20 = vrot.slane %v332_v18, %v331_v15 }
 0x16f   :  { %v341_v23 = vmul.f32 %v339_v20, %v285_v19 }
 0x171   :  { %v350_v24 = vrot.slane %v341_v23, %v349_v21  ;;  %v346_v25 = vrot.slane %v341_v23, %v345_v22 }
 0x173   :  { %v354_v26 = vmul.f32 %v350_v24, %v300_v52  ;;  %v375_v27 = vmul.f32 %v350_v24, %v280_v37  ;;  %v353_v28 = vmul.f32 %v346_v25, %v299_v51  ;;  %v374_v29 = vmul.f32 %v346_v25, %v278_v35 }
 0x175   :  { %v357_v30 = vcombine.low %v353_v28, %v354_v26 }
 0x177   :  { %v364_v31 = vrot.slane %v357_v30, %v331_v15 }
 0x179   :  { %v371_v33 = vrot.slane %v364_v31, %v331_v15 }
 0x17b   :  { %v373_v34 = vsub.f32 %v286_v32, %v371_v33 }
 0x17d   :  { %v380_v36 = vrot.slane %v373_v34, %v345_v22  ;;  %v384_v38 = vrot.slane %v373_v34, %v349_v21 }
 0x17f   :  { %v387_v39 = vadd.f32 %v380_v36, %v374_v29  ;;  %v388_v40 = vadd.f32 %v384_v38, %v375_v27 }
 0x181   :  { %v389_v41 = vmax.f32 %v387_v39, 0.0  ;;  %v390_v42 = vmax.f32 %v388_v40, 0.0 }
 0x183   :  { %391 = vst [vmem:[#allocation7] sm:$0xff] %v389_v41  ;;  %392 = vst [vmem:[#allocation7 + $0x8] sm:$0xff] %v390_v42 }
 0x184   :  { %558 = shalt.err (!%p555_p6)
}
 0x185   :  { %s559_s20 = scalar_lea.hbm %s659_s4, 256 }
 0x186   :  { %p560_p7 = scmp.ne.s32.totalorder %s659_s4, %s559_s20  ;;  %p563_p8 = scmp.lt.u32.totalorder %s559_s20, %s659_s4 }
 0x188   :  { %p565_p9 = pnand %p563_p8, %p560_p7 }
 0x18a   :  { %568 = shalt.err (!%p565_p9)
}
 0x18b   :  { %402 = dma.vmem_to_hbm [thread:$0]  %s400_s17, 256, %s659_s4, [#allocation4]  }
 0x18c   :  { %573 = dma.done.wait [#allocation4], 256  }
 0x18d   :  { %574 = vsyncadd [#allocation4], 4294967040 }
 0x18e   :  { %406 = vsyncpa [#allocation3], 1 }
 0x18f   :  { %407 = vsyncpa [#allocation6], 1 }
 0x190   :  { %408 = vsyncpa [#allocation4], 1 }

</bundles_post_ra>
